<compile_context>
chip_gen: v7x
topology: tpu7x:2x2x1
jax: 0.10.0
libtpu: 0.0.40
codegen_flags: <defaults>
</compile_context>

<pallas_src>
import functools

import jax
import jax.numpy as jnp
from jax.experimental import pallas as pl
from jax.experimental.pallas import tpu as pltpu

FP = 128  # lane-dense packed feature width


# ----------------------------------------------------------------------------
# Fused Pallas kernel: all 3 hetero layers, all relations, all node types.
# ----------------------------------------------------------------------------
def _rgcn_fused_kernel(x_ref, a_ref, w1_ref, w2_ref, w3_ref,
                       b1_ref, b2_ref, b3_ref, o_ref, *, n_types, np_rows):
    """x_ref : [T, NP, FP]   bf16 input features (type t at lanes [0:in_feats_t))
       a_ref : [T*NP, T*NP]  bf16 block adjacency; block (dst d, src s) = A_{s->d}
       w*_ref: [T, FP, FP]   bf16 slot-packed per-source-type weights, layers 1..3
       b*_ref: [T, NP, FP]   f32  per-dst summed bias (valid rows & dst slot only)
       o_ref : [T, NP, FP]   f32  layer-3 output (type t at its slot lanes)"""
    asum = a_ref[...]                                   # [T*NP, T*NP]
    feats = [x_ref[t] for t in range(n_types)]          # bf16 [NP, FP] each

    def layer(feats, w_ref, b_ref, relu):
        # (1) One packed feature-transform matmul per *source* type.
        z = [jnp.dot(feats[s], w_ref[s], preferred_element_type=jnp.float32)
             for s in range(n_types)]
        # (2) One aggregation matmul covering every (dst, src) relation block.
        zall = jnp.concatenate(z, axis=0).astype(jnp.bfloat16)   # [T*NP, FP]
        mixed = jnp.dot(asum, zall, preferred_element_type=jnp.float32)
        # (3) Per-dst finalize fused into the value: bias + ReLU, no VMEM RMW.
        #     Lanes outside the dst's slot hold inert data and are never read
        #     back (next layer's packed weights have zero rows there).
        out = []
        for d in range(n_types):
            y = mixed[d * np_rows:(d + 1) * np_rows, :] + b_ref[d]
            if relu:
                y = jnp.maximum(y, 0.0)
            out.append(y)
        return out

    h = layer(feats, w1_ref, b1_ref, relu=True)
    # TODO(synk): dropout(p=0.2) is identity here (eval-mode semantics).
    h = [v.astype(jnp.bfloat16) for v in h]
    h = layer(h, w2_ref, b2_ref, relu=True)
    h = [v.astype(jnp.bfloat16) for v in h]
    y = layer(h, w3_ref, b3_ref, relu=False)
    for d in range(n_types):
        o_ref[d] = y[d]          # single lane-dense f32 store per dst type


def rgcn_forward_fused(x, asum, w1, w2, w3, b1, b2, b3):
    t, np_rows, fp = x.shape
    kernel = functools.partial(_rgcn_fused_kernel, n_types=t, np_rows=np_rows)
    vmem = pl.BlockSpec(memory_space=pltpu.MemorySpace.VMEM)   # whole array, no pipeline
    return pl.pallas_call(
        kernel,
        out_shape=jax.ShapeDtypeStruct((t, np_rows, fp), jnp.float32),
        in_specs=[vmem] * 8,
        out_specs=vmem,
    )(x, asum, w1, w2, w3, b1, b2, b3)


# ----------------------------------------------------------------------------
# Glue (plain JAX): graph construction, degree normalization, parameter init
# ----------------------------------------------------------------------------
def dense_adj(src_idx, dst_idx, n_src, n_dst):
    a = jnp.zeros((n_dst, n_src), jnp.float32)
    return a.at[dst_idx, src_idx].add(1.0)


def normalize_adj(a):
    # a: [N_dst, N_src].  norm='both': D_dst_in^-1/2  A  D_src_out^-1/2
    deg_out_src = jnp.clip(a.sum(axis=0), 1.0, None)
    deg_in_dst = jnp.clip(a.sum(axis=1), 1.0, None)
    return a * (deg_in_dst[:, None] ** -0.5) * (deg_out_src[None, :] ** -0.5)


def glorot(key, shape):
    fan_in, fan_out = shape
    limit = (6.0 / (fan_in + fan_out)) ** 0.5
    return jax.random.uniform(key, shape, jnp.float32, -limit, limit)


def _round_up(x, m):
    return ((x + m - 1) // m) * m


# ----------------------------------------------------------------------------
# Main
# ----------------------------------------------------------------------------
if __name__ == "__main__":
    key = jax.random.PRNGKey(0)

    # Node types and counts (toy sizes).
    n_nodes = {"user": 12, "item": 16}
    in_feats = {"user": 8, "item": 6}
    hid_feats, out_feats = 16, 4

    # rel_names: list of (srctype, etype, dsttype)
    rel_names = [
        ("user", "follows", "user"),
        ("user", "likes", "item"),
        ("item", "liked_by", "user"),
    ]

    # Deterministic synthetic edges -> dense normalized adjacencies (logical).
    adj_norm = {}
    for st, et, dt in rel_names:
        key, k1, k2 = jax.random.split(key, 3)
        n_edges = 24
        src = jax.random.randint(k1, (n_edges,), 0, n_nodes[st])
        dst = jax.random.randint(k2, (n_edges,), 0, n_nodes[dt])
        adj_norm[et] = normalize_adj(
            dense_adj(src, dst, n_nodes[st], n_nodes[dt]))

    # Deterministic parameters (Glorot weights, zero bias — matches DGL init).
    params = {"conv1": {}, "conv2": {}, "conv3": {}}
    for st, et, dt in rel_names:
        key, k1, k2, k3 = jax.random.split(key, 4)
        params["conv1"][et] = (glorot(k1, (in_feats[st], hid_feats)),
                               jnp.zeros((hid_feats,), jnp.float32))
        params["conv2"][et] = (glorot(k2, (hid_feats, hid_feats)),
                               jnp.zeros((hid_feats,), jnp.float32))
        params["conv3"][et] = (glorot(k3, (hid_feats, out_feats)),
                               jnp.zeros((out_feats,), jnp.float32))

    # Deterministic input node features.
    inputs = {}
    for nt, n in n_nodes.items():
        key, k = jax.random.split(key)
        inputs[nt] = jax.random.normal(k, (n, in_feats[nt]), jnp.float32)

    # -------------------- pack / pad everything for the fused kernel --------
    types = list(n_nodes.keys())
    t_idx = {t: i for i, t in enumerate(types)}
    T = len(types)
    NP = _round_up(max(n_nodes.values()), 8)     # sublane-aligned node count
    SLOT = hid_feats                             # per-type lane slot (>= out_feats)
    assert out_feats <= SLOT and T * SLOT <= FP
    slot = {t: t_idx[t] * SLOT for t in types}

    # Packing assumes at most one relation per (src-type, dst-type) pair.
    assert len({(st, dt) for st, _, dt in rel_names}) == len(rel_names)

    # Input features: type t at lanes [0:in_feats[t]), valid rows only.
    x_stack = jnp.zeros((T, NP, FP), jnp.float32)
    for t in types:
        x_stack = x_stack.at[t_idx[t], :n_nodes[t], :in_feats[t]].set(inputs[t])

    # Block adjacency: block (dst d, src s) = normalized A of relation s->d.
    asum = jnp.zeros((T * NP, T * NP), jnp.float32)
    for st, et, dt in rel_names:
        asum = asum.at[t_idx[dt] * NP:t_idx[dt] * NP + n_nodes[dt],
                       t_idx[st] * NP:t_idx[st] * NP + n_nodes[st]].set(adj_norm[et])

    def pack_w(layer, row_off):
        # One packed weight per source type: rows = where that type's features
        # live in the incoming representation, columns = destination slot.
        w = jnp.zeros((T, FP, FP), jnp.float32)
        for st, et, dt in rel_names:
            wr = params[layer][et][0]
            ro = row_off(st)
            w = w.at[t_idx[st], ro:ro + wr.shape[0],
                     slot[dt]:slot[dt] + wr.shape[1]].set(wr)
        return w.astype(jnp.bfloat16)

    def pack_b(layer):
        # Per-dst-type summed bias (commutes with the relation sum), placed at
        # the dst slot lanes and masked to valid rows (padding stays 0).
        b = jnp.zeros((T, NP, FP), jnp.float32)
        for st, et, dt in rel_names:
            br = params[layer][et][1]
            b = b.at[t_idx[dt], :n_nodes[dt],
                     slot[dt]:slot[dt] + br.shape[0]].add(
                jnp.broadcast_to(br, (n_nodes[dt], br.shape[0])))
        return b

    w1 = pack_w("conv1", lambda st: 0)          # layer-1 input lives at lanes [0:in)
    w2 = pack_w("conv2", lambda st: slot[st])   # hidden features live at slot lanes
    w3 = pack_w("conv3", lambda st: slot[st])
    b1, b2, b3 = pack_b("conv1"), pack_b("conv2"), pack_b("conv3")

    out_pad = rgcn_forward_fused(x_stack.astype(jnp.bfloat16),
                                 asum.astype(jnp.bfloat16),
                                 w1, w2, w3, b1, b2, b3)
    jax.block_until_ready(out_pad)

    recv_types = {dt for _, _, dt in rel_names}
    out = {t: out_pad[t_idx[t], :n_nodes[t], slot[t]:slot[t] + out_feats]
           for t in recv_types}

    # -------------------- pure-JAX f32 reference for correctness ------------
    def ref_layer(feats, layer_params, relu):
        contrib = {}
        for st, et, dt in rel_names:
            w, b = layer_params[et]
            y = adj_norm[et] @ feats[st] @ w + b
            contrib[dt] = contrib.get(dt, 0.0) + y
        if relu:
            contrib = {k: jnp.maximum(v, 0.0) for k, v in contrib.items()}
        return contrib

    h_ref = ref_layer(inputs, params["conv1"], True)
    h_ref = ref_layer(h_ref, params["conv2"], True)
    ref = ref_layer(h_ref, params["conv3"], False)

    # Tolerance sized for bf16 MXU operands (eps ~ 2^-8) vs. an f32 reference
    # accumulated over three layers; reference itself stays in f32.
    for t in recv_types:
        assert out[t].shape == (n_nodes[t], out_feats)
        assert jnp.all(jnp.isfinite(out[t]))
        assert jnp.allclose(out[t], ref[t], rtol=3e-2, atol=3e-2), (
            f"mismatch for node type {t}")

    print("KERNEL_OK")
</pallas_src>

<mosaic_0001>
module attributes {stable_mosaic.version = 11 : i64} {
  func.func @_rgcn_fused_kernel(%arg0: memref<2x16x128xbf16, #tpu.memory_space<vmem>>, %arg1: memref<32x32xbf16, #tpu.memory_space<vmem>>, %arg2: memref<2x128x128xbf16, #tpu.memory_space<vmem>>, %arg3: memref<2x128x128xbf16, #tpu.memory_space<vmem>>, %arg4: memref<2x128x128xbf16, #tpu.memory_space<vmem>>, %arg5: memref<2x16x128xf32, #tpu.memory_space<vmem>>, %arg6: memref<2x16x128xf32, #tpu.memory_space<vmem>>, %arg7: memref<2x16x128xf32, #tpu.memory_space<vmem>>, %arg8: memref<2x16x128xf32, #tpu.memory_space<vmem>>) attributes {dimension_semantics = [], scalar_prefetch = 0 : i64, scratch_operands = 0 : i64, tpu.core_type = #tpu.core_type<tc>} {
    %c0 = arith.constant 0 : index
    %c0_0 = arith.constant 0 : index
    %0 = vector.load %arg1[%c0, %c0_0] : memref<32x32xbf16, #tpu.memory_space<vmem>>, vector<32x32xbf16>
    %c0_1 = arith.constant 0 : index
    %c0_2 = arith.constant 0 : index
    %c0_3 = arith.constant 0 : index
    %1 = vector.load %arg0[%c0_1, %c0_2, %c0_3] : memref<2x16x128xbf16, #tpu.memory_space<vmem>>, vector<1x16x128xbf16>
    %2 = vector.shape_cast %1 : vector<1x16x128xbf16> to vector<16x128xbf16>
    %c1 = arith.constant 1 : index
    %c0_4 = arith.constant 0 : index
    %c0_5 = arith.constant 0 : index
    %3 = vector.load %arg0[%c1, %c0_4, %c0_5] : memref<2x16x128xbf16, #tpu.memory_space<vmem>>, vector<1x16x128xbf16>
    %4 = vector.shape_cast %3 : vector<1x16x128xbf16> to vector<16x128xbf16>
    %c0_6 = arith.constant 0 : index
    %c0_7 = arith.constant 0 : index
    %c0_8 = arith.constant 0 : index
    %5 = vector.load %arg2[%c0_6, %c0_7, %c0_8] : memref<2x128x128xbf16, #tpu.memory_space<vmem>>, vector<1x128x128xbf16>
    %6 = vector.shape_cast %5 : vector<1x128x128xbf16> to vector<128x128xbf16>
    %cst = arith.constant dense<0.000000e+00> : vector<16x128xf32>
    %7 = tpu.matmul %2, %6, %cst {dimension_numbers = #tpu.dot_dimension_numbers<[1], [0], [0], [1], [0, 0, 1, 1], [], []>} : vector<16x128xbf16>, vector<128x128xbf16>, vector<16x128xf32> -> vector<16x128xf32>
    %c1_9 = arith.constant 1 : index
    %c0_10 = arith.constant 0 : index
    %c0_11 = arith.constant 0 : index
    %8 = vector.load %arg2[%c1_9, %c0_10, %c0_11] : memref<2x128x128xbf16, #tpu.memory_space<vmem>>, vector<1x128x128xbf16>
    %9 = vector.shape_cast %8 : vector<1x128x128xbf16> to vector<128x128xbf16>
    %cst_12 = arith.constant dense<0.000000e+00> : vector<16x128xf32>
    %10 = tpu.matmul %4, %9, %cst_12 {dimension_numbers = #tpu.dot_dimension_numbers<[1], [0], [0], [1], [0, 0, 1, 1], [], []>} : vector<16x128xbf16>, vector<128x128xbf16>, vector<16x128xf32> -> vector<16x128xf32>
    %11 = tpu.concatenate %7, %10 in 0 : vector<16x128xf32>, vector<16x128xf32> -> vector<32x128xf32>
    %12 = arith.truncf %11 : vector<32x128xf32> to vector<32x128xbf16>
    %cst_13 = arith.constant dense<0.000000e+00> : vector<32x128xf32>
    %13 = tpu.matmul %0, %12, %cst_13 {dimension_numbers = #tpu.dot_dimension_numbers<[1], [0], [0], [1], [0, 0, 1, 1], [], []>} : vector<32x32xbf16>, vector<32x128xbf16>, vector<32x128xf32> -> vector<32x128xf32>
    %14 = vector.extract_strided_slice %13 {offsets = [0, 0], sizes = [16, 128], strides = [1, 1]} : vector<32x128xf32> to vector<16x128xf32>
    %c0_14 = arith.constant 0 : index
    %c0_15 = arith.constant 0 : index
    %c0_16 = arith.constant 0 : index
    %15 = vector.load %arg5[%c0_14, %c0_15, %c0_16] : memref<2x16x128xf32, #tpu.memory_space<vmem>>, vector<1x16x128xf32>
    %16 = vector.shape_cast %15 : vector<1x16x128xf32> to vector<16x128xf32>
    %17 = arith.addf %14, %16 : vector<16x128xf32>
    %cst_17 = arith.constant 0.000000e+00 : f32
    %18 = vector.broadcast %cst_17 : f32 to vector<16x128xf32>
    %19 = arith.maximumf %17, %18 : vector<16x128xf32>
    %20 = vector.extract_strided_slice %13 {offsets = [16, 0], sizes = [16, 128], strides = [1, 1]} : vector<32x128xf32> to vector<16x128xf32>
    %c1_18 = arith.constant 1 : index
    %c0_19 = arith.constant 0 : index
    %c0_20 = arith.constant 0 : index
    %21 = vector.load %arg5[%c1_18, %c0_19, %c0_20] : memref<2x16x128xf32, #tpu.memory_space<vmem>>, vector<1x16x128xf32>
    %22 = vector.shape_cast %21 : vector<1x16x128xf32> to vector<16x128xf32>
    %23 = arith.addf %20, %22 : vector<16x128xf32>
    %cst_21 = arith.constant 0.000000e+00 : f32
    %24 = vector.broadcast %cst_21 : f32 to vector<16x128xf32>
    %25 = arith.maximumf %23, %24 : vector<16x128xf32>
    %26 = arith.truncf %19 : vector<16x128xf32> to vector<16x128xbf16>
    %27 = arith.truncf %25 : vector<16x128xf32> to vector<16x128xbf16>
    %c0_22 = arith.constant 0 : index
    %c0_23 = arith.constant 0 : index
    %c0_24 = arith.constant 0 : index
    %28 = vector.load %arg3[%c0_22, %c0_23, %c0_24] : memref<2x128x128xbf16, #tpu.memory_space<vmem>>, vector<1x128x128xbf16>
    %29 = vector.shape_cast %28 : vector<1x128x128xbf16> to vector<128x128xbf16>
    %cst_25 = arith.constant dense<0.000000e+00> : vector<16x128xf32>
    %30 = tpu.matmul %26, %29, %cst_25 {dimension_numbers = #tpu.dot_dimension_numbers<[1], [0], [0], [1], [0, 0, 1, 1], [], []>} : vector<16x128xbf16>, vector<128x128xbf16>, vector<16x128xf32> -> vector<16x128xf32>
    %c1_26 = arith.constant 1 : index
    %c0_27 = arith.constant 0 : index
    %c0_28 = arith.constant 0 : index
    %31 = vector.load %arg3[%c1_26, %c0_27, %c0_28] : memref<2x128x128xbf16, #tpu.memory_space<vmem>>, vector<1x128x128xbf16>
    %32 = vector.shape_cast %31 : vector<1x128x128xbf16> to vector<128x128xbf16>
    %cst_29 = arith.constant dense<0.000000e+00> : vector<16x128xf32>
    %33 = tpu.matmul %27, %32, %cst_29 {dimension_numbers = #tpu.dot_dimension_numbers<[1], [0], [0], [1], [0, 0, 1, 1], [], []>} : vector<16x128xbf16>, vector<128x128xbf16>, vector<16x128xf32> -> vector<16x128xf32>
    %34 = tpu.concatenate %30, %33 in 0 : vector<16x128xf32>, vector<16x128xf32> -> vector<32x128xf32>
    %35 = arith.truncf %34 : vector<32x128xf32> to vector<32x128xbf16>
    %cst_30 = arith.constant dense<0.000000e+00> : vector<32x128xf32>
    %36 = tpu.matmul %0, %35, %cst_30 {dimension_numbers = #tpu.dot_dimension_numbers<[1], [0], [0], [1], [0, 0, 1, 1], [], []>} : vector<32x32xbf16>, vector<32x128xbf16>, vector<32x128xf32> -> vector<32x128xf32>
    %37 = vector.extract_strided_slice %36 {offsets = [0, 0], sizes = [16, 128], strides = [1, 1]} : vector<32x128xf32> to vector<16x128xf32>
    %c0_31 = arith.constant 0 : index
    %c0_32 = arith.constant 0 : index
    %c0_33 = arith.constant 0 : index
    %38 = vector.load %arg6[%c0_31, %c0_32, %c0_33] : memref<2x16x128xf32, #tpu.memory_space<vmem>>, vector<1x16x128xf32>
    %39 = vector.shape_cast %38 : vector<1x16x128xf32> to vector<16x128xf32>
    %40 = arith.addf %37, %39 : vector<16x128xf32>
    %cst_34 = arith.constant 0.000000e+00 : f32
    %41 = vector.broadcast %cst_34 : f32 to vector<16x128xf32>
    %42 = arith.maximumf %40, %41 : vector<16x128xf32>
    %43 = vector.extract_strided_slice %36 {offsets = [16, 0], sizes = [16, 128], strides = [1, 1]} : vector<32x128xf32> to vector<16x128xf32>
    %c1_35 = arith.constant 1 : index
    %c0_36 = arith.constant 0 : index
    %c0_37 = arith.constant 0 : index
    %44 = vector.load %arg6[%c1_35, %c0_36, %c0_37] : memref<2x16x128xf32, #tpu.memory_space<vmem>>, vector<1x16x128xf32>
    %45 = vector.shape_cast %44 : vector<1x16x128xf32> to vector<16x128xf32>
    %46 = arith.addf %43, %45 : vector<16x128xf32>
    %cst_38 = arith.constant 0.000000e+00 : f32
    %47 = vector.broadcast %cst_38 : f32 to vector<16x128xf32>
    %48 = arith.maximumf %46, %47 : vector<16x128xf32>
    %49 = arith.truncf %42 : vector<16x128xf32> to vector<16x128xbf16>
    %50 = arith.truncf %48 : vector<16x128xf32> to vector<16x128xbf16>
    %c0_39 = arith.constant 0 : index
    %c0_40 = arith.constant 0 : index
    %c0_41 = arith.constant 0 : index
    %51 = vector.load %arg4[%c0_39, %c0_40, %c0_41] : memref<2x128x128xbf16, #tpu.memory_space<vmem>>, vector<1x128x128xbf16>
    %52 = vector.shape_cast %51 : vector<1x128x128xbf16> to vector<128x128xbf16>
    %cst_42 = arith.constant dense<0.000000e+00> : vector<16x128xf32>
    %53 = tpu.matmul %49, %52, %cst_42 {dimension_numbers = #tpu.dot_dimension_numbers<[1], [0], [0], [1], [0, 0, 1, 1], [], []>} : vector<16x128xbf16>, vector<128x128xbf16>, vector<16x128xf32> -> vector<16x128xf32>
    %c1_43 = arith.constant 1 : index
    %c0_44 = arith.constant 0 : index
    %c0_45 = arith.constant 0 : index
    %54 = vector.load %arg4[%c1_43, %c0_44, %c0_45] : memref<2x128x128xbf16, #tpu.memory_space<vmem>>, vector<1x128x128xbf16>
    %55 = vector.shape_cast %54 : vector<1x128x128xbf16> to vector<128x128xbf16>
    %cst_46 = arith.constant dense<0.000000e+00> : vector<16x128xf32>
    %56 = tpu.matmul %50, %55, %cst_46 {dimension_numbers = #tpu.dot_dimension_numbers<[1], [0], [0], [1], [0, 0, 1, 1], [], []>} : vector<16x128xbf16>, vector<128x128xbf16>, vector<16x128xf32> -> vector<16x128xf32>
    %57 = tpu.concatenate %53, %56 in 0 : vector<16x128xf32>, vector<16x128xf32> -> vector<32x128xf32>
    %58 = arith.truncf %57 : vector<32x128xf32> to vector<32x128xbf16>
    %cst_47 = arith.constant dense<0.000000e+00> : vector<32x128xf32>
    %59 = tpu.matmul %0, %58, %cst_47 {dimension_numbers = #tpu.dot_dimension_numbers<[1], [0], [0], [1], [0, 0, 1, 1], [], []>} : vector<32x32xbf16>, vector<32x128xbf16>, vector<32x128xf32> -> vector<32x128xf32>
    %60 = vector.extract_strided_slice %59 {offsets = [0, 0], sizes = [16, 128], strides = [1, 1]} : vector<32x128xf32> to vector<16x128xf32>
    %c0_48 = arith.constant 0 : index
    %c0_49 = arith.constant 0 : index
    %c0_50 = arith.constant 0 : index
    %61 = vector.load %arg7[%c0_48, %c0_49, %c0_50] : memref<2x16x128xf32, #tpu.memory_space<vmem>>, vector<1x16x128xf32>
    %62 = vector.shape_cast %61 : vector<1x16x128xf32> to vector<16x128xf32>
    %63 = arith.addf %60, %62 : vector<16x128xf32>
    %64 = vector.extract_strided_slice %59 {offsets = [16, 0], sizes = [16, 128], strides = [1, 1]} : vector<32x128xf32> to vector<16x128xf32>
    %c1_51 = arith.constant 1 : index
    %c0_52 = arith.constant 0 : index
    %c0_53 = arith.constant 0 : index
    %65 = vector.load %arg7[%c1_51, %c0_52, %c0_53] : memref<2x16x128xf32, #tpu.memory_space<vmem>>, vector<1x16x128xf32>
    %66 = vector.shape_cast %65 : vector<1x16x128xf32> to vector<16x128xf32>
    %67 = arith.addf %64, %66 : vector<16x128xf32>
    %c0_54 = arith.constant 0 : index
    %c0_55 = arith.constant 0 : index
    %c0_56 = arith.constant 0 : index
    %68 = vector.load %arg8[%c0_54, %c0_55, %c0_56] : memref<2x16x128xf32, #tpu.memory_space<vmem>>, vector<1x16x128xf32>
    %69 = vector.shape_cast %68 : vector<1x16x128xf32> to vector<16x128xf32>
    %70 = vector.shape_cast %63 : vector<16x128xf32> to vector<1x16x128xf32>
    tpu.vector_store %arg8[%c0_54, %c0_55, %c0_56], %70 {strides = array<i32>} : memref<2x16x128xf32, #tpu.memory_space<vmem>>, vector<1x16x128xf32>,
    %c1_57 = arith.constant 1 : index
    %c0_58 = arith.constant 0 : index
    %c0_59 = arith.constant 0 : index
    %71 = vector.load %arg8[%c1_57, %c0_58, %c0_59] : memref<2x16x128xf32, #tpu.memory_space<vmem>>, vector<1x16x128xf32>
    %72 = vector.shape_cast %71 : vector<1x16x128xf32> to vector<16x128xf32>
    %73 = vector.shape_cast %67 : vector<16x128xf32> to vector<1x16x128xf32>
    tpu.vector_store %arg8[%c1_57, %c0_58, %c0_59], %73 {strides = array<i32>} : memref<2x16x128xf32, #tpu.memory_space<vmem>>, vector<1x16x128xf32>,
    return
  }
}

</mosaic_0001>

<bundles_post_ra>
// kernel: tpu_custom_call.1
= control target key start
LH: loop header
LB: loop body
LE: loop exit
PB: predicated region body
PF: predicated region fallthrough
CT: control target
= control target key end

     0   :  { %13 = vsyncpa [#allocation3], 0  ;;  %s1852_s0 = inlined_call_operand.hbm [shape: bf16[2,16,128], index: 0, kind: input, shape index: {}]   ;;  %s1853_s1 = inlined_call_operand.hbm [shape: bf16[32,32], index: 1, kind: input, shape index: {}]   ;;  %s1854_s2 = inlined_call_operand.hbm [shape: bf16[2,128,128], index: 2, kind: input, shape index: {}]   ;;  %s1855_s3 = inlined_call_operand.hbm [shape: bf16[2,128,128], index: 3, kind: input, shape index: {}]   ;;  %s1856_s4 = inlined_call_operand.hbm [shape: bf16[2,128,128], index: 4, kind: input, shape index: {}]   ;;  %s1857_s5 = inlined_call_operand.hbm [shape: f32[2,16,128], index: 5, kind: input, shape index: {}]   ;;  %s1858_s6 = inlined_call_operand.hbm [shape: f32[2,16,128], index: 6, kind: input, shape index: {}]   ;;  %s1859_s7 = inlined_call_operand.hbm [shape: f32[2,16,128], index: 7, kind: input, shape index: {}]   ;;  %s1860_s8 = inlined_call_operand.hbm [shape: f32[2,16,128], index: 8, kind: output, shape index: {}]  }
   0x1   :  { %14 = vsyncpa [#allocation6], 0 }
   0x2   :  { %15 = vsyncpa [#allocation9], 0 }
   0x3   :  { %16 = vsyncpa [#allocation12], 0 }
   0x4   :  { %17 = vsyncpa [#allocation15], 0 }
   0x5   :  { %18 = vsyncpa [#allocation4], 0  ;;  %s1574_s27 = smov [#allocation5]   ;;  %s1575_s29 = smov [#allocation8]  }
   0x6   :  { %s36_s28 = sshll.u32 %s1574_s27, 4  ;;  %s60_s30 = sshll.u32 %s1575_s29, 4  ;;  %s37_s28 = int_to_ptr.vmem [resolvable:$true] %s36_s28  ;;  %s1634_s30 = int_to_ptr.vmem [resolvable:$true] %s60_s30 }
   0x7   :  { %s1364_s11 = scalar_lea.hbm %s1853_s1, 256 }
   0x8   :  { %p1365_p0 = scmp.ne.s32.totalorder %s1853_s1, %s1364_s11  ;;  %p1368_p1 = scmp.lt.u32.totalorder %s1364_s11, %s1853_s1 }
   0xa   :  { %p1370_p2 = pnand %p1368_p1, %p1365_p0 }
   0xc   :  { %1373 = shalt.err (!%p1370_p2)
}
   0xd   :  { %s1374_s16 = scalar_lea.vmem %s37_s28, 256  ;;  %p1379_p4 = scmp.lt.s32.totalorder %s37_s28, %s37_s28 }
   0xe   :  { %p1375_p3 = scmp.ne.s32.totalorder %s37_s28, %s1374_s16  ;;  %p1380_p5 = scmp.lt.s32.totalorder %s1374_s16, %s1374_s16 }
  0x10   :  { %p1381_p6 = por %p1380_p5, %p1379_p4 }
  0x12   :  { %p1382_p7 = pnand %p1381_p6, %p1375_p3 }
  0x14   :  { %1385 = shalt.err (!%p1382_p7)
}
  0x15   :  { %s1576_s17 = smov 64   ;;  %s1577_s18 = smov 4  }
  0x16   :  { %42 = dma.hbm_to_vmem [thread:$0]  %s1853_s1, 256, %s37_s28, [#allocation6], %s1576_s17, %s1576_s17, %s1577_s18  }
  0x17   :  { %s1386_s23 = scalar_lea.hbm %s1855_s3, 2048 }
  0x18   :  { %p1387_p8 = scmp.ne.s32.totalorder %s1855_s3, %s1386_s23  ;;  %p1390_p9 = scmp.lt.u32.totalorder %s1386_s23, %s1855_s3 }
  0x1a   :  { %p1392_p10 = pnand %p1390_p9, %p1387_p8 }
  0x1c   :  { %1395 = shalt.err (!%p1392_p10)
}
  0x1d   :  { %s1396_s29 = scalar_lea.vmem %s1634_s30, 2048  ;;  %p1401_p12 = scmp.lt.s32.totalorder %s1634_s30, %s1634_s30 }
  0x1e   :  { %p1397_p11 = scmp.ne.s32.totalorder %s1634_s30, %s1396_s29  ;;  %p1402_p13 = scmp.lt.s32.totalorder %s1396_s29, %s1396_s29 }
  0x20   :  { %p1403_p0 = por %p1402_p13, %p1401_p12 }
  0x22   :  { %p1404_p1 = pnand %p1403_p0, %p1397_p11 }
  0x24   :  { %1407 = shalt.err (!%p1404_p1)
}
  0x25   :  { %66 = dma.hbm_to_vmem [thread:$0]  %s1855_s3, 2048, %s1634_s30, [#allocation9], %s1576_s17, %s1576_s17, %s1577_s18  }
  0x26   :  { %s1578_s9 = smov [#allocation11]   ;;  %s1408_s13 = scalar_lea.hbm %s1857_s5, 512 }
  0x27   :  { %s84_s10 = sshll.u32 %s1578_s9, 4  ;;  %p1409_p2 = scmp.ne.s32.totalorder %s1857_s5, %s1408_s13  ;;  %s85_s10 = int_to_ptr.vmem [resolvable:$true] %s84_s10 }
  0x28   :  { %p1412_p3 = scmp.lt.u32.totalorder %s1408_s13, %s1857_s5 }
  0x2a   :  { %p1414_p4 = pnand %p1412_p3, %p1409_p2 }
  0x2c   :  { %1417 = shalt.err (!%p1414_p4)
}
  0x2d   :  { %s1418_s20 = scalar_lea.vmem %s85_s10, 512  ;;  %p1423_p6 = scmp.lt.s32.totalorder %s85_s10, %s85_s10 }
  0x2e   :  { %p1419_p5 = scmp.ne.s32.totalorder %s85_s10, %s1418_s20  ;;  %p1424_p7 = scmp.lt.s32.totalorder %s1418_s20, %s1418_s20 }
  0x30   :  { %p1425_p8 = por %p1424_p7, %p1423_p6 }
  0x32   :  { %p1426_p9 = pnand %p1425_p8, %p1419_p5 }
  0x34   :  { %1429 = shalt.err (!%p1426_p9)
}
  0x35   :  { %s1579_s3 = smov 128   ;;  %s1580_s30 = smov 8  }
  0x36   :  { %90 = dma.hbm_to_vmem [thread:$0]  %s1857_s5, 512, %s85_s10, [#allocation12], %s1579_s3, %s1579_s3, %s1580_s30  }
  0x37   :  { %s1581_s23 = smov [#allocation2]   ;;  %s1582_s25 = smov [#allocation7]  }
  0x38   :  { %s24_s24 = sshll.u32 %s1581_s23, 4  ;;  %s48_s26 = sshll.u32 %s1582_s25, 4  ;;  %s25_s24 = int_to_ptr.vmem [resolvable:$true] %s24_s24  ;;  %s49_s26 = int_to_ptr.vmem [resolvable:$true] %s48_s26 }
  0x39   :  { %s1430_s1 = scalar_lea.hbm %s1852_s0, 256 }
  0x3a   :  { %p1431_p10 = scmp.ne.s32.totalorder %s1852_s0, %s1430_s1  ;;  %p1434_p11 = scmp.lt.u32.totalorder %s1430_s1, %s1852_s0 }
  0x3c   :  { %p1436_p12 = pnand %p1434_p11, %p1431_p10 }
  0x3e   :  { %1439 = shalt.err (!%p1436_p12)
}
  0x3f   :  { %s1440_s5 = scalar_lea.vmem %s25_s24, 256  ;;  %p1445_p0 = scmp.lt.s32.totalorder %s25_s24, %s25_s24 }
  0x40   :  { %p1441_p13 = scmp.ne.s32.totalorder %s25_s24, %s1440_s5  ;;  %p1446_p1 = scmp.lt.s32.totalorder %s1440_s5, %s1440_s5 }
  0x42   :  { %p1447_p2 = por %p1446_p1, %p1445_p0 }
  0x44   :  { %p1448_p3 = pnand %p1447_p2, %p1441_p13 }
  0x46   :  { %1451 = shalt.err (!%p1448_p3)
}
  0x47   :  { %30 = dma.hbm_to_vmem [thread:$0]  %s1852_s0, 256, %s25_s24, [#allocation3], %s1576_s17, %s1576_s17, %s1577_s18  }
  0x48   :  { %s1452_s16 = scalar_lea.hbm %s1854_s2, 2048 }
  0x49   :  { %p1453_p4 = scmp.ne.s32.totalorder %s1854_s2, %s1452_s16  ;;  %p1456_p5 = scmp.lt.u32.totalorder %s1452_s16, %s1854_s2 }
  0x4b   :  { %p1458_p6 = pnand %p1456_p5, %p1453_p4 }
  0x4d   :  { %1461 = shalt.err (!%p1458_p6)
}
  0x4e   :  { %s1462_s23 = scalar_lea.vmem %s49_s26, 2048  ;;  %p1467_p8 = scmp.lt.s32.totalorder %s49_s26, %s49_s26 }
  0x4f   :  { %p1463_p7 = scmp.ne.s32.totalorder %s49_s26, %s1462_s23  ;;  %p1468_p9 = scmp.lt.s32.totalorder %s1462_s23, %s1462_s23 }
  0x51   :  { %p1469_p10 = por %p1468_p9, %p1467_p8 }
  0x53   :  { %p1470_p11 = pnand %p1469_p10, %p1463_p7 }
  0x55   :  { %1473 = shalt.err (!%p1470_p11)
}
  0x56   :  { %54 = dma.hbm_to_vmem [thread:$0]  %s1854_s2, 2048, %s49_s26, [#allocation6], %s1576_s17, %s1576_s17, %s1577_s18  }
  0x57   :  { %s1583_s25 = smov [#allocation10]   ;;  %s1584_s29 = smov [#allocation13]  }
  0x58   :  { %s72_s27 = sshll.u32 %s1583_s25, 4  ;;  %s96_s1 = sshll.u32 %s1584_s29, 4  ;;  %s73_s27 = int_to_ptr.vmem [resolvable:$true] %s72_s27  ;;  %s97_s1 = int_to_ptr.vmem [resolvable:$true] %s96_s1 }
  0x59   :  { %s1474_s11 = scalar_lea.hbm %s1856_s4, 2048 }
  0x5a   :  { %p1475_p12 = scmp.ne.s32.totalorder %s1856_s4, %s1474_s11  ;;  %p1478_p13 = scmp.lt.u32.totalorder %s1474_s11, %s1856_s4 }
  0x5c   :  { %p1480_p0 = pnand %p1478_p13, %p1475_p12 }
  0x5e   :  { %1483 = shalt.err (!%p1480_p0)
}
  0x5f   :  { %s1484_s2 = scalar_lea.vmem %s73_s27, 2048  ;;  %p1489_p2 = scmp.lt.s32.totalorder %s73_s27, %s73_s27 }
  0x60   :  { %p1485_p1 = scmp.ne.s32.totalorder %s73_s27, %s1484_s2  ;;  %p1490_p3 = scmp.lt.s32.totalorder %s1484_s2, %s1484_s2 }
  0x62   :  { %p1491_p4 = por %p1490_p3, %p1489_p2 }
  0x64   :  { %p1492_p5 = pnand %p1491_p4, %p1485_p1 }
  0x66   :  { %1495 = shalt.err (!%p1492_p5)
}
  0x67   :  { %78 = dma.hbm_to_vmem [thread:$0]  %s1856_s4, 2048, %s73_s27, [#allocation9], %s1576_s17, %s1576_s17, %s1577_s18  }
  0x68   :  { %s1496_s19 = scalar_lea.hbm %s1858_s6, 512 }
  0x69   :  { %p1497_p6 = scmp.ne.s32.totalorder %s1858_s6, %s1496_s19  ;;  %p1500_p7 = scmp.lt.u32.totalorder %s1496_s19, %s1858_s6 }
  0x6b   :  { %p1502_p8 = pnand %p1500_p7, %p1497_p6 }
  0x6d   :  { %1505 = shalt.err (!%p1502_p8)
}
  0x6e   :  { %s1506_s0 = scalar_lea.vmem %s97_s1, 512  ;;  %p1511_p10 = scmp.lt.s32.totalorder %s97_s1, %s97_s1 }
  0x6f   :  { %p1507_p9 = scmp.ne.s32.totalorder %s97_s1, %s1506_s0  ;;  %p1512_p11 = scmp.lt.s32.totalorder %s1506_s0, %s1506_s0 }
  0x71   :  { %p1513_p12 = por %p1512_p11, %p1511_p10 }
  0x73   :  { %p1514_p13 = pnand %p1513_p12, %p1507_p9 }
  0x75   :  { %1517 = shalt.err (!%p1514_p13)
}
  0x76   :  { %102 = dma.hbm_to_vmem [thread:$0]  %s1858_s6, 512, %s97_s1, [#allocation12], %s1579_s3, %s1579_s3, %s1580_s30  }
  0x77   :  { %s1585_s18 = smov [#allocation14]   ;;  %s1518_s29 = scalar_lea.hbm %s1859_s7, 512 }
  0x78   :  { %s108_s24 = sshll.u32 %s1585_s18, 4  ;;  %p1519_p0 = scmp.ne.s32.totalorder %s1859_s7, %s1518_s29  ;;  %s109_s24 = int_to_ptr.vmem [resolvable:$true] %s108_s24 }
  0x79   :  { %p1522_p1 = scmp.lt.u32.totalorder %s1518_s29, %s1859_s7 }
  0x7b   :  { %p1524_p2 = pnand %p1522_p1, %p1519_p0 }
  0x7d   :  { %1527 = shalt.err (!%p1524_p2)
}
  0x7e   :  { %s1528_s5 = scalar_lea.vmem %s109_s24, 512  ;;  %p1533_p4 = scmp.lt.s32.totalorder %s109_s24, %s109_s24 }
  0x7f   :  { %p1529_p3 = scmp.ne.s32.totalorder %s109_s24, %s1528_s5  ;;  %p1534_p5 = scmp.lt.s32.totalorder %s1528_s5, %s1528_s5 }
  0x81   :  { %p1535_p6 = por %p1534_p5, %p1533_p4 }
  0x83   :  { %p1536_p7 = pnand %p1535_p6, %p1529_p3 }
  0x85   :  { %1539 = shalt.err (!%p1536_p7)
}
  0x86   :  { %114 = dma.hbm_to_vmem [thread:$0]  %s1859_s7, 512, %s109_s24, [#allocation15], %s1579_s3, %s1579_s3, %s1580_s30  }
  0x87   :  { %1562 = dma.done.wait [#allocation3], 256  }
  0x88   :  { %1563 = vsyncadd [#allocation3], 4294967040 }
  0x89   :  { %1564 = dma.done.wait [#allocation6], 2304  }
  0x8a   :  { %1565 = vsyncadd [#allocation6], 4294964992 }
  0x8b   :  { %1566 = dma.done.wait [#allocation9], 4096  }
  0x8c   :  { %1567 = vsyncadd [#allocation9], 4294963200 }
  0x8d   :  { %1568 = dma.done.wait [#allocation12], 1024  }
  0x8e   :  { %1569 = vsyncadd [#allocation12], 4294966272 }
  0x8f   :  { %1570 = dma.done.wait [#allocation15], 512  }
  0x90   :  { %1571 = vsyncadd [#allocation15], 4294966784  ;;  %v1586_v0 = vmov 0.0   ;;  %vm1587_vm0 = vmmov 0   ;;  %v1312_v1 = vld [vmem:[#allocation7] sm:$0xff]   ;;  %v1314_v3 = vld [vmem:[#allocation7 + $0x8] sm:$0xff]  }
  0x91   :  { %1153 = vmatprep.subr.bf16.mxu0 %v1586_v0  ;;  %1173 = vmatprep.subr.bf16.mxu1 %v1586_v0  ;;  %v1313_v2 = vld [vmem:[#allocation7 + $0x40] sm:$0xff]   ;;  %v1315_v4 = vld [vmem:[#allocation7 + $0x48] sm:$0xff]   ;;  %v1316_v5 = vld [vmem:[#allocation7 + $0x10] sm:$0xff]   ;;  %vm384_vm1 = vcmask 261120   ;;  %s1588_s7 = smov [#allocation16]  }
  0x92   :  { %1169 = vmatprep.mubr.msk.bf16.mxu0 %vm1587_vm0, %v1586_v0  ;;  %1189 = vmatprep.mubr.msk.bf16.mxu1 %vm1587_vm0, %v1586_v0  ;;  %v1317_v6 = vld [vmem:[#allocation7 + $0x50] sm:$0xff]   ;;  %v1318_v7 = vld [vmem:[#allocation7 + $0x18] sm:$0xff]   ;;  %v1320_v9 = vld [vmem:[#allocation7 + $0x20] sm:$0xff]   ;;  %s1013_s10 = sshll.u32 %s1588_s7, 4  ;;  %s1014_s10 = int_to_ptr.vmem [resolvable:$true] %s1013_s10 }
  0x93   :  { %1154 = vmatpush3.bf16.msra.mxu0 %v1312_v1  ;;  %1174 = vmatpush3.bf16.msra.mxu1 %v1313_v2  ;;  %v1319_v8 = vld [vmem:[#allocation7 + $0x58] sm:$0xff]   ;;  %v1321_v10 = vld [vmem:[#allocation7 + $0x60] sm:$0xff]   ;;  %v1322_v11 = vld [vmem:[#allocation7 + $0x28] sm:$0xff]   ;;  %s1540_s13 = scalar_lea.vmem %s1014_s10, 512  ;;  %p1545_p9 = scmp.lt.s32.totalorder %s1014_s10, %s1014_s10 }
  0x94   :  { %1155 = vmatprep.subr.bf16.mxu0 %v1586_v0  ;;  %1175 = vmatprep.subr.bf16.mxu1 %v1586_v0  ;;  %v1323_v12 = vld [vmem:[#allocation7 + $0x68] sm:$0xff]   ;;  %v1324_v13 = vld [vmem:[#allocation7 + $0x30] sm:$0xff]   ;;  %v1326_v15 = vld [vmem:[#allocation7 + $0x38] sm:$0xff]   ;;  %p1541_p8 = scmp.ne.s32.totalorder %s1014_s10, %s1540_s13  ;;  %p1546_p10 = scmp.lt.s32.totalorder %s1540_s13, %s1540_s13 }
  0x95   :  { %v1325_v14 = vld [vmem:[#allocation7 + $0x70] sm:$0xff]   ;;  %v1327_v16 = vld [vmem:[#allocation7 + $0x78] sm:$0xff]   ;;  %v1328_v17 = vld [vmem:[#allocation2] sm:$0xff]  }
  0x96   :  { %v1329_v18 = vld [vmem:[#allocation2 + $0x8] sm:$0xff]   ;;  %v1784_v19 = vld [vmem:[#allocation5] sm:$0xff]   ;;  %v1333_v20 = vld [vmem:[#allocation8] sm:$0xff]   ;;  %p1547_p11 = por %p1546_p10, %p1545_p9 }
  0x97   :  { %1156 = vmatpush3.bf16.msra.mxu0 %v1314_v3  ;;  %1176 = vmatpush3.bf16.msra.mxu1 %v1315_v4  ;;  %v1335_v21 = vld [vmem:[#allocation8 + $0x8] sm:$0xff]   ;;  %v1337_v22 = vld [vmem:[#allocation8 + $0x10] sm:$0xff]   ;;  %v1339_v23 = vld [vmem:[#allocation8 + $0x18] sm:$0xff]  }
  0x98   :  { %1157 = vmatprep.subr.bf16.mxu0 %v1586_v0  ;;  %1177 = vmatprep.subr.bf16.mxu1 %v1586_v0  ;;  %v1341_v24 = vld [vmem:[#allocation8 + $0x20] sm:$0xff]   ;;  %v1343_v25 = vld [vmem:[#allocation8 + $0x28] sm:$0xff]   ;;  %v1794_v36 = vld [vmem:[#allocation5 + $0x8] sm:$0xff]   ;;  %p1548_p12 = pnand %p1547_p11, %p1541_p8 }
  0x99   :  { %v1332_v37 = vld [vmem:[#allocation8 + $0x40] sm:$0xff]   ;;  %v1334_v38 = vld [vmem:[#allocation8 + $0x48] sm:$0xff]   ;;  %v1336_v39 = vld [vmem:[#allocation8 + $0x50] sm:$0xff]  }
  0x9a   :  { %v1338_v40 = vld [vmem:[#allocation8 + $0x58] sm:$0xff]   ;;  %v1340_v41 = vld [vmem:[#allocation8 + $0x60] sm:$0xff]   ;;  %v1342_v42 = vld [vmem:[#allocation8 + $0x68] sm:$0xff]  }
  0x9b   :  { %1158 = vmatpush3.bf16.msra.mxu0 %v1316_v5  ;;  %1178 = vmatpush3.bf16.msra.mxu1 %v1317_v6  ;;  %v1344_v43 = vld [vmem:[#allocation8 + $0x70] sm:$0xff]   ;;  %v1346_v45 = vld [vmem:[#allocation8 + $0x78] sm:$0xff]   ;;  %v440_v48 = vld [vmem:[#allocation11] sm:$0xff] }
  0x9c   :  { %1159 = vmatprep.subr.bf16.mxu0 %v1586_v0  ;;  %1179 = vmatprep.subr.bf16.mxu1 %v1586_v0  ;;  %v1345_v44 = vld [vmem:[#allocation8 + $0x30] sm:$0xff]   ;;  %v1347_v46 = vld [vmem:[#allocation8 + $0x38] sm:$0xff]   ;;  %v441_v53 = vld [vmem:[#allocation11 + $0x8] sm:$0xff] }
  0x9d   :  { %v447_v47 = vld [vmem:[#allocation11 + $0x10] sm:$0xff]  ;;  %v448_v50 = vld [vmem:[#allocation11 + $0x18] sm:$0xff]  ;;  %v1349_v2 = vld [vmem:[#allocation10] sm:$0xff]  }
  0x9e   :  { %v1351_v3 = vld [vmem:[#allocation10 + $0x8] sm:$0xff]   ;;  %v1353_v4 = vld [vmem:[#allocation10 + $0x10] sm:$0xff]   ;;  %v1355_v5 = vld [vmem:[#allocation10 + $0x18] sm:$0xff]  }
  0x9f   :  { %1160 = vmatpush3.bf16.msra.mxu0 %v1318_v7  ;;  %1180 = vmatpush3.bf16.msra.mxu1 %v1319_v8  ;;  %v1357_v6 = vld [vmem:[#allocation10 + $0x20] sm:$0xff]   ;;  %v1359_v7 = vld [vmem:[#allocation10 + $0x28] sm:$0xff]  }
  0xa0   :  { %1161 = vmatprep.subr.bf16.mxu0 %v1586_v0  ;;  %1181 = vmatprep.subr.bf16.mxu1 %v1586_v0 }
  0xa3   :  { %1162 = vmatpush3.bf16.msra.mxu0 %v1320_v9  ;;  %1182 = vmatpush3.bf16.msra.mxu1 %v1321_v10 }
  0xa4   :  { %1163 = vmatprep.subr.bf16.mxu0 %v1586_v0  ;;  %1183 = vmatprep.subr.bf16.mxu1 %v1586_v0 }
  0xa7   :  { %1164 = vmatpush3.bf16.msra.mxu0 %v1322_v11  ;;  %1184 = vmatpush3.bf16.msra.mxu1 %v1323_v12 }
  0xa8   :  { %1165 = vmatprep.subr.bf16.mxu0 %v1586_v0  ;;  %1185 = vmatprep.subr.bf16.mxu1 %v1586_v0 }
  0xab   :  { %1166 = vmatpush3.bf16.msra.mxu0 %v1324_v13  ;;  %1186 = vmatpush3.bf16.msra.mxu1 %v1325_v14 }
  0xac   :  { %1167 = vmatprep.subr.bf16.mxu0 %v1586_v0  ;;  %1187 = vmatprep.subr.bf16.mxu1 %v1586_v0 }
  0xaf   :  { %1168 = vmatpush3.bf16.msra.mxu0 %v1326_v15  ;;  %1188 = vmatpush3.bf16.msra.mxu1 %v1327_v16 }
  0xb0   :  { %1201 = vmatprep.subr.bf16.mxu1 %v1586_v0 }
  0xb2   :  { %1170 = vmatmul.mubr.bf16.vlgmr.msra.gmra.mrb[0].mxu0 %v1328_v17  ;;  %1190 = vmatmul.mubr.bf16.vlgmr.msra.gmra.mrb[0].mxu1 %v1329_v18  ;;  %v1348_v18 = vld [vmem:[#allocation10 + $0x40] sm:$0xff]  }
  0xb3   :  { %1217 = vmatprep.mubr.msk.bf16.mxu1 %vm1587_vm0, %v1586_v0  ;;  %1197 = vmatprep.mubr.msk.bf16.mxu0 %vm384_vm1, %v1784_v19 }
  0xb4   :  { %1202 = vmatpush3.bf16.msra.mxu1 %v1333_v20  ;;  %v1350_v20 = vld [vmem:[#allocation10 + $0x48] sm:$0xff]  }
  0xb5   :  { %1203 = vmatprep.subr.bf16.mxu1 %v1586_v0 }
  0xb8   :  { %1204 = vmatpush3.bf16.msra.mxu1 %v1335_v21  ;;  %v1352_v21 = vld [vmem:[#allocation10 + $0x50] sm:$0xff]  }
  0xb9   :  { %1205 = vmatprep.subr.bf16.mxu1 %v1586_v0 }
  0xbc   :  { %1206 = vmatpush3.bf16.msra.mxu1 %v1337_v22  ;;  %v1354_v22 = vld [vmem:[#allocation10 + $0x58] sm:$0xff]  }
  0xbd   :  { %1207 = vmatprep.subr.bf16.mxu1 %v1586_v0 }
  0xc0   :  { %1208 = vmatpush3.bf16.msra.mxu1 %v1339_v23  ;;  %v1356_v23 = vld [vmem:[#allocation10 + $0x60] sm:$0xff]  }
  0xc1   :  { %1209 = vmatprep.subr.bf16.mxu1 %v1586_v0 }
  0xc4   :  { %1210 = vmatpush3.bf16.msra.mxu1 %v1341_v24  ;;  %v1358_v24 = vld [vmem:[#allocation10 + $0x68] sm:$0xff]  }
  0xc5   :  { %1211 = vmatprep.subr.bf16.mxu1 %v1586_v0 }
  0xc8   :  { %1212 = vmatpush3.bf16.msra.mxu1 %v1343_v25  ;;  %v1360_v25 = vld [vmem:[#allocation10 + $0x70] sm:$0xff]  }
  0xc9   :  { %1213 = vmatprep.subr.bf16.mxu1 %v1586_v0 }
  0xcc   :  { %1214 = vmatpush3.bf16.msra.mxu1 %v1345_v44 }
  0xcd   :  { %1215 = vmatprep.subr.bf16.mxu1 %v1586_v0 }
  0xd0   :  { %1216 = vmatpush3.bf16.msra.mxu1 %v1347_v46 }
 0x185   :  { %v253_v26 = vpop.f32.mrb[0].mxu0  ;;  %v365_v28 = vpop.f32.mrb[0].mxu1 }
 0x186   :  { %v1171_v27 = vpop.f32.mrb[1].mxu0  ;;  %v1191_v30 = vpop.f32.mrb[1].mxu1 }
 0x187   :  { %v256_v29 = vpop.f32.mrb[2].mxu0  ;;  %v368_v33 = vpop.f32.mrb[2].mxu1  ;;  %v1362_v27 = vld [vmem:[#allocation10 + $0x78] sm:$0xff]   ;;  %v717_v30 = vld [vmem:[#allocation13] sm:$0xff] }
 0x188   :  { %v372_v31 = vpack.c.bf16 %v256_v29, %v253_v26  ;;  %v1172_v32 = vpop.f32.mrb[3].mxu0  ;;  %v373_v34 = vpack.c.bf16 %v368_v33, %v365_v28  ;;  %v1192_v35 = vpop.f32.mrb[3].mxu1  ;;  %v1361_v26 = vld [vmem:[#allocation10 + $0x30] sm:$0xff]   ;;  %v1363_v28 = vld [vmem:[#allocation10 + $0x38] sm:$0xff]  }
 0x189   :  { %v724_v29 = vld [vmem:[#allocation13 + $0x10] sm:$0xff]  ;;  %v725_v32 = vld [vmem:[#allocation13 + $0x18] sm:$0xff]  ;;  %v718_v35 = vld [vmem:[#allocation13 + $0x8] sm:$0xff] }
 0x18a   :  { %1193 = vmatprep.subr.bf16.mxu0 %v372_v31 }
 0x18b   :  { %1194 = vmatpush3.bf16.msra.mxu0 %v372_v31 }
 0x18c   :  { %1195 = vmatprep.subr.bf16.mxu0 %v373_v34 }
 0x18f   :  { %1196 = vmatpush3.bf16.msra.mxu0 %v373_v34 }
 0x190   :  { %1221 = vmatprep.subr.bf16.mxu0 %v1586_v0 }
 0x192   :  { %1198 = vmatmul.mubr.msk.bf16.vlgmr.msra.gmra.mrb[4].mxu0 %vm384_vm1, %v1794_v36 }
 0x193   :  { %1222 = vmatpush3.bf16.msra.mxu0 %v1332_v37  ;;  %1237 = vmatprep.mubr.msk.bf16.mxu0 %vm1587_vm0, %v1586_v0 }
 0x194   :  { %1223 = vmatprep.subr.bf16.mxu0 %v1586_v0 }
 0x197   :  { %1224 = vmatpush3.bf16.msra.mxu0 %v1334_v38 }
 0x198   :  { %1225 = vmatprep.subr.bf16.mxu0 %v1586_v0 }
 0x19b   :  { %1226 = vmatpush3.bf16.msra.mxu0 %v1336_v39 }
 0x19c   :  { %1227 = vmatprep.subr.bf16.mxu0 %v1586_v0 }
 0x19f   :  { %1228 = vmatpush3.bf16.msra.mxu0 %v1338_v40 }
 0x1a0   :  { %1229 = vmatprep.subr.bf16.mxu0 %v1586_v0 }
 0x1a3   :  { %1230 = vmatpush3.bf16.msra.mxu0 %v1340_v41 }
 0x1a4   :  { %1231 = vmatprep.subr.bf16.mxu0 %v1586_v0 }
 0x1a7   :  { %1232 = vmatpush3.bf16.msra.mxu0 %v1342_v42 }
 0x1a8   :  { %1233 = vmatprep.subr.bf16.mxu0 %v1586_v0 }
 0x1ab   :  { %1234 = vmatpush3.bf16.msra.mxu0 %v1344_v43 }
 0x1ac   :  { %1235 = vmatprep.subr.bf16.mxu0 %v1586_v0 }
 0x1af   :  { %1236 = vmatpush3.bf16.msra.mxu0 %v1346_v45 }
 0x1b0   :  { %1249 = vmatprep.subr.bf16.mxu0 %v1586_v0 }
 0x265   :  { %v1199_v49 = vpop.f32.mrb[4].mxu0 }
 0x266   :  { %v449_v51 = vadd.f32 %v1199_v49, %v447_v47  ;;  %v425_v52 = vpop.f32.mrb[5].mxu0 }
 0x267   :  { %v442_v54 = vadd.f32 %v440_v48, %v425_v52  ;;  %v1200_v55 = vpop.f32.mrb[6].mxu0 }
 0x268   :  { %v450_v56 = vadd.f32 %v1200_v55, %v448_v50  ;;  %v428_v57 = vpop.f32.mrb[7].mxu0  ;;  %v451_v59 = vmax.f32 %v449_v51, 0.0 }
 0x269   :  { %v443_v58 = vadd.f32 %v441_v53, %v428_v57  ;;  %v444_v61 = vmax.f32 %v442_v54, 0.0  ;;  %v999_v57 = vld [vmem:[#allocation14 + $0x10] sm:$0xff] }
 0x26a   :  { %v452_v60 = vmax.f32 %v450_v56, 0.0 }
 0x26b   :  { %v445_v62 = vmax.f32 %v443_v58, 0.0  ;;  %v994_v58 = vld [vmem:[#allocation14] sm:$0xff] }
 0x26c   :  { %v454_v63 = vpack.c.bf16 %v452_v60, %v451_v59  ;;  %v1000_v59 = vld [vmem:[#allocation14 + $0x18] sm:$0xff] }
 0x26d   :  { %v453_v1 = vpack.c.bf16 %v445_v62, %v444_v61  ;;  %v995_v62 = vld [vmem:[#allocation14 + $0x8] sm:$0xff] }
 0x26e   :  { %1238 = vmatmul.mubr.bf16.vlgmr.msra.gmra.mrb[8].mxu0 %v454_v63 }
 0x26f   :  { %1218 = vmatmul.mubr.bf16.vlgmr.msra.gmra.mrb[4].mxu1 %v453_v1  ;;  %1265 = vmatprep.mubr.msk.bf16.mxu0 %vm1587_vm0, %v1586_v0 }
 0x270   :  { %1245 = vmatprep.mubr.msk.bf16.mxu1 %vm384_vm1, %v1784_v19  ;;  %1250 = vmatpush3.bf16.msra.mxu0 %v1349_v2 }
 0x271   :  { %1251 = vmatprep.subr.bf16.mxu0 %v1586_v0 }
 0x274   :  { %1252 = vmatpush3.bf16.msra.mxu0 %v1351_v3 }
 0x275   :  { %1253 = vmatprep.subr.bf16.mxu0 %v1586_v0 }
 0x278   :  { %1254 = vmatpush3.bf16.msra.mxu0 %v1353_v4 }
 0x279   :  { %1255 = vmatprep.subr.bf16.mxu0 %v1586_v0 }
 0x27c   :  { %1256 = vmatpush3.bf16.msra.mxu0 %v1355_v5 }
 0x27d   :  { %1257 = vmatprep.subr.bf16.mxu0 %v1586_v0 }
 0x280   :  { %1258 = vmatpush3.bf16.msra.mxu0 %v1357_v6 }
 0x281   :  { %1259 = vmatprep.subr.bf16.mxu0 %v1586_v0 }
 0x284   :  { %1260 = vmatpush3.bf16.msra.mxu0 %v1359_v7 }
 0x285   :  { %1261 = vmatprep.subr.bf16.mxu0 %v1586_v0 }
 0x288   :  { %1262 = vmatpush3.bf16.msra.mxu0 %v1361_v26 }
 0x289   :  { %1263 = vmatprep.subr.bf16.mxu0 %v1586_v0 }
 0x28c   :  { %1264 = vmatpush3.bf16.msra.mxu0 %v1363_v28 }
 0x341   :  { %v659_v8 = vpop.f32.mrb[8].mxu0 }
 0x342   :  { %v553_v9 = vpop.f32.mrb[4].mxu1  ;;  %v1239_v10 = vpop.f32.mrb[9].mxu0 }
 0x343   :  { %v1219_v11 = vpop.f32.mrb[5].mxu1  ;;  %v662_v12 = vpop.f32.mrb[10].mxu0 }
 0x344   :  { %v667_v13 = vpack.c.bf16 %v662_v12, %v659_v8  ;;  %v556_v14 = vpop.f32.mrb[6].mxu1  ;;  %v1240_v15 = vpop.f32.mrb[11].mxu0 }
 0x345   :  { %v666_v16 = vpack.c.bf16 %v556_v14, %v553_v9  ;;  %v1220_v17 = vpop.f32.mrb[7].mxu1 }
 0x347   :  { %1241 = vmatprep.subr.bf16.mxu1 %v666_v16 }
 0x348   :  { %1242 = vmatpush3.bf16.msra.mxu1 %v666_v16 }
 0x349   :  { %1243 = vmatprep.subr.bf16.mxu1 %v667_v13 }
 0x34c   :  { %1244 = vmatpush3.bf16.msra.mxu1 %v667_v13 }
 0x34d   :  { %1269 = vmatprep.subr.bf16.mxu1 %v1586_v0 }
 0x34f   :  { %1246 = vmatmul.mubr.msk.bf16.vlgmr.msra.gmra.mrb[8].mxu1 %vm384_vm1, %v1794_v36 }
 0x350   :  { %1270 = vmatpush3.bf16.msra.mxu1 %v1348_v18  ;;  %1285 = vmatprep.mubr.msk.bf16.mxu1 %vm1587_vm0, %v1586_v0 }
 0x351   :  { %1271 = vmatprep.subr.bf16.mxu1 %v1586_v0 }
 0x354   :  { %1272 = vmatpush3.bf16.msra.mxu1 %v1350_v20 }
 0x355   :  { %1273 = vmatprep.subr.bf16.mxu1 %v1586_v0 }
 0x358   :  { %1274 = vmatpush3.bf16.msra.mxu1 %v1352_v21 }
 0x359   :  { %1275 = vmatprep.subr.bf16.mxu1 %v1586_v0 }
 0x35c   :  { %1276 = vmatpush3.bf16.msra.mxu1 %v1354_v22 }
 0x35d   :  { %1277 = vmatprep.subr.bf16.mxu1 %v1586_v0 }
 0x360   :  { %1278 = vmatpush3.bf16.msra.mxu1 %v1356_v23 }
 0x361   :  { %1279 = vmatprep.subr.bf16.mxu1 %v1586_v0 }
 0x364   :  { %1280 = vmatpush3.bf16.msra.mxu1 %v1358_v24 }
 0x365   :  { %1281 = vmatprep.subr.bf16.mxu1 %v1586_v0 }
 0x368   :  { %1282 = vmatpush3.bf16.msra.mxu1 %v1360_v25 }
 0x369   :  { %1283 = vmatprep.subr.bf16.mxu1 %v1586_v0 }
 0x36c   :  { %1284 = vmatpush3.bf16.msra.mxu1 %v1362_v27 }
 0x422   :  { %v1247_v31 = vpop.f32.mrb[8].mxu1 }
 0x423   :  { %v726_v33 = vadd.f32 %v1247_v31, %v724_v29  ;;  %v702_v34 = vpop.f32.mrb[9].mxu1 }
 0x424   :  { %v719_v37 = vadd.f32 %v717_v30, %v702_v34  ;;  %v1248_v38 = vpop.f32.mrb[10].mxu1 }
 0x425   :  { %v727_v39 = vadd.f32 %v1248_v38, %v725_v32  ;;  %v705_v40 = vpop.f32.mrb[11].mxu1  ;;  %v728_v42 = vmax.f32 %v726_v33, 0.0 }
 0x426   :  { %v720_v41 = vadd.f32 %v718_v35, %v705_v40  ;;  %v721_v44 = vmax.f32 %v719_v37, 0.0 }
 0x427   :  { %v729_v43 = vmax.f32 %v727_v39, 0.0 }
 0x428   :  { %v722_v0 = vmax.f32 %v720_v41, 0.0 }
 0x429   :  { %v731_v45 = vpack.c.bf16 %v729_v43, %v728_v42 }
 0x42a   :  { %v730_v46 = vpack.c.bf16 %v722_v0, %v721_v44 }
 0x42b   :  { %1286 = vmatmul.mubr.bf16.vlgmr.msra.gmra.mrb[12].mxu1 %v731_v45 }
 0x42c   :  { %1266 = vmatmul.mubr.bf16.vlgmr.msra.gmra.mrb[12].mxu0 %v730_v46 }
 0x42d   :  { %1293 = vmatprep.mubr.msk.bf16.mxu0 %vm384_vm1, %v1784_v19 }
 0x4fe   :  { %v936_v47 = vpop.f32.mrb[12].mxu1 }
 0x4ff   :  { %v830_v48 = vpop.f32.mrb[12].mxu0  ;;  %v1287_v49 = vpop.f32.mrb[13].mxu1 }
 0x500   :  { %v1267_v50 = vpop.f32.mrb[13].mxu0  ;;  %v939_v51 = vpop.f32.mrb[14].mxu1 }
 0x501   :  { %v944_v52 = vpack.c.bf16 %v939_v51, %v936_v47  ;;  %v833_v53 = vpop.f32.mrb[14].mxu0  ;;  %v1288_v54 = vpop.f32.mrb[15].mxu1 }
 0x502   :  { %v943_v55 = vpack.c.bf16 %v833_v53, %v830_v48  ;;  %v1268_v56 = vpop.f32.mrb[15].mxu0 }
 0x504   :  { %1289 = vmatprep.subr.bf16.mxu0 %v943_v55 }
 0x505   :  { %1290 = vmatpush3.bf16.msra.mxu0 %v943_v55 }
 0x506   :  { %1291 = vmatprep.subr.bf16.mxu0 %v944_v52 }
 0x509   :  { %1292 = vmatpush3.bf16.msra.mxu0 %v944_v52 }
 0x50c   :  { %1294 = vmatmul.mubr.msk.bf16.vlgmr.msra.gmra.mrb[16].mxu0 %vm384_vm1, %v1794_v36 }
 0x5df   :  { %v1295_v19 = vpop.f32.mrb[16].mxu0 }
 0x5e0   :  { %v1001_v60 = vadd.f32 %v1295_v19, %v999_v57  ;;  %v979_v61 = vpop.f32.mrb[17].mxu0 }
 0x5e1   :  { %v996_v63 = vadd.f32 %v994_v58, %v979_v61  ;;  %v1296_v1 = vpop.f32.mrb[18].mxu0 }
 0x5e2   :  { %1006 = vst [vmem:[#allocation16 + $0x10] sm:$0xff] %v1001_v60  ;;  %v1002_v2 = vadd.f32 %v1296_v1, %v1000_v59  ;;  %v982_v3 = vpop.f32.mrb[19].mxu0 }
 0x5e3   :  { %1003 = vst [vmem:[#allocation16] sm:$0xff] %v996_v63  ;;  %v997_v4 = vadd.f32 %v995_v62, %v982_v3 }
 0x5e4   :  { %1007 = vst [vmem:[#allocation16 + $0x18] sm:$0xff] %v1002_v2 }
 0x5e5   :  { %1004 = vst [vmem:[#allocation16 + $0x8] sm:$0xff] %v997_v4 }
 0x5e6   :  { %1551 = shalt.err (!%p1548_p12)
}
 0x5e7   :  { %s1552_s14 = scalar_lea.hbm %s1860_s8, 512 }
 0x5e8   :  { %p1553_p13 = scmp.ne.s32.totalorder %s1860_s8, %s1552_s14  ;;  %p1556_p0 = scmp.lt.u32.totalorder %s1552_s14, %s1860_s8 }
 0x5ea   :  { %p1558_p1 = pnand %p1556_p0, %p1553_p13 }
 0x5ec   :  { %1561 = shalt.err (!%p1558_p1)
}
 0x5ed   :  { %1019 = dma.vmem_to_hbm [thread:$0]  %s1014_s10, 512, %s1860_s8, [#allocation4], %s1579_s3, %s1579_s3, %s1580_s30  }
 0x5ee   :  { %1572 = dma.done.wait [#allocation4], 512  }
 0x5ef   :  { %1573 = vsyncadd [#allocation4], 4294966784 }
 0x5f0   :  { %1023 = vsyncpa [#allocation3], 1 }
 0x5f1   :  { %1024 = vsyncpa [#allocation6], 1 }
 0x5f2   :  { %1025 = vsyncpa [#allocation9], 1 }
 0x5f3   :  { %1026 = vsyncpa [#allocation12], 1 }
 0x5f4   :  { %1027 = vsyncpa [#allocation15], 1 }
 0x5f5   :  { %1028 = vsyncpa [#allocation4], 1 }

</bundles_post_ra>
